<compile_context>
chip_gen: v5e
topology: v5e:2x2
jax: 0.10.0
libtpu: 0.0.40
codegen_flags: <defaults>
</compile_context>

<pallas_src>
import functools

import jax
import jax.numpy as jnp
from jax.experimental import pallas as pl
from jax.experimental.pallas import tpu as pltpu

EPS = 1e-5                 # nn.BatchNorm1d default
BRANCH_CH = 32             # channels per branch (fixed by the PyTorch module)
N_BRANCH = 3 * BRANCH_CH   # 96 = concatenated branch channels (== residual out_ch)
N_MAIN = 2 * N_BRANCH      # 192 rows of the "even tap" matmul (3 branches + residual)
N_WROWS = N_MAIN + 2 * BRANCH_CH   # 256 = main rows + branch2 prev/next tap rows


# ----------------------------- Pallas kernel ------------------------------- #
def _residual_block_kernel(x_ref, halo_ref, w_ref, t_ref, out_ref):
    # x_ref   : (2, C, T)  plane 0 = x[2l] (even taps), plane 1 = x[2l+1] (next taps)
    # halo_ref: (C, 1)     x[2*l0 - 1] for the first output column of this tile (0 for tile 0)
    # w_ref   : (256, C)   rows [0:192)  -> even-tap weights for [b1; b2_center; b3; residual]
    #                      rows [192:224)-> branch2 prev-tap, rows [224:256) -> branch2 next-tap
    #                      (BN scale already folded in)
    # t_ref   : (192, 1)   per-channel shift (conv bias + BN), f32
    # out_ref : (96, T)
    even = x_ref[0]                                      # (C, T)
    nxt = x_ref[1]                                       # (C, T)

    # prev tap plane = next plane shifted right by one output position; the first
    # column comes from the halo (zero for the very first tile == conv's left pad).
    rolled = pltpu.roll(nxt, shift=1, axis=1)            # XLU lane rotation
    col = jax.lax.broadcasted_iota(jnp.int32, rolled.shape, 1)
    prev = jnp.where(col == 0, halo_ref[...], rolled)

    # Dense even-tap matmul (branch1, branch2 center tap, branch3, residual).
    y = jnp.dot(w_ref[0:N_MAIN, :], even, preferred_element_type=jnp.float32)
    y = y + t_ref[...]                                    # (192, T) f32
    # Branch2 side taps (small matmuls; avoids the 2.25x zero-padded stacked dot).
    yb2 = (jnp.dot(w_ref[N_MAIN:N_MAIN + BRANCH_CH, :], prev,
                   preferred_element_type=jnp.float32) +
           jnp.dot(w_ref[N_MAIN + BRANCH_CH:N_WROWS, :], nxt,
                   preferred_element_type=jnp.float32))   # (32, T) f32

    b1 = jnp.maximum(y[0:BRANCH_CH, :], 0.0)
    b2 = jnp.maximum(y[BRANCH_CH:2 * BRANCH_CH, :] + yb2, 0.0)
    b3 = jnp.maximum(y[2 * BRANCH_CH:N_BRANCH, :], 0.0)
    res = y[N_BRANCH:N_MAIN, :]                           # residual path (no ReLU)

    out_ref[0:BRANCH_CH, :] = jnp.maximum(
        b1 + res[0:BRANCH_CH, :], 0.0).astype(out_ref.dtype)
    out_ref[BRANCH_CH:2 * BRANCH_CH, :] = jnp.maximum(
        b2 + res[BRANCH_CH:2 * BRANCH_CH, :], 0.0).astype(out_ref.dtype)
    out_ref[2 * BRANCH_CH:N_BRANCH, :] = jnp.maximum(
        b3 + res[2 * BRANCH_CH:N_BRANCH, :], 0.0).astype(out_ref.dtype)


# ------------------------------ JAX wrapper -------------------------------- #
def _pick_lane_tile(l_out, max_tile, batch):
    """Largest legal lane tile (128-multiple or full axis), megacore-balanced."""
    if l_out % 128 != 0:
        return l_out if l_out <= max_tile else max_tile
    tile = min(l_out, max_tile)
    n_tiles = l_out // tile
    # v7x has 2 TensorCores: prefer an even total number of grid steps.
    if (batch * n_tiles) % 2 == 1 and batch * n_tiles > 1 and tile >= 256:
        tile //= 2
    return tile


def _fold_bn_scale_shift(gamma, beta, mean, var, bias):
    """Inference BN + conv bias -> per-channel scale (folded into W) and shift."""
    s = gamma * jax.lax.rsqrt(var + EPS)
    t = (bias - mean) * s + beta
    return s, t


def _build_block_weights(params, compute_dtype):
    """Fuse the 4 convs + BN into one (256, C) weight and one (192, 1) shift."""
    s1, t1 = _fold_bn_scale_shift(*params['bn1'], params['b1'])
    s2, t2 = _fold_bn_scale_shift(*params['bn2'], params['b2'])
    s3, t3 = _fold_bn_scale_shift(*params['bn3'], params['b3'])
    sr, tr = _fold_bn_scale_shift(*params['bnr'], params['br'])

    w_main = jnp.concatenate([
        s1[:, None] * params['w1'][:, :, 0],      # branch1 (k=1)
        s2[:, None] * params['w2'][:, :, 1],      # branch2 center tap
        s3[:, None] * params['w3'][:, :, 0],      # branch3 (k=1)
        sr[:, None] * params['wr'][:, :, 0],      # residual (k=1)
    ], axis=0)                                     # (192, C)
    w_side = jnp.concatenate([
        s2[:, None] * params['w2'][:, :, 0],      # branch2 prev tap
        s2[:, None] * params['w2'][:, :, 2],      # branch2 next tap
    ], axis=0)                                     # (64, C)
    w = jnp.concatenate([w_main, w_side], axis=0)  # (256, C)
    shifts = jnp.concatenate([t1, t2, t3, tr])[:, None]   # (192, 1)
    return w.astype(compute_dtype), shifts.astype(jnp.float32)


def _split_even_odd(x, l_out, compute_dtype):
    """(N, 2, C, L_out): plane 0 = x[2l], plane 1 = x[2l+1] (zero past signal end)."""
    even_p = x[:, :, 0::2]                                # (N, C, l_out)
    odd_p = x[:, :, 1::2]                                 # (N, C, l//2)
    if odd_p.shape[-1] < l_out:
        odd_p = jnp.pad(odd_p, ((0, 0), (0, 0), (0, l_out - odd_p.shape[-1])))
    return jnp.stack([even_p, odd_p], axis=1).astype(compute_dtype)


def _build_halo(odd_p, lane_tile, n_tiles, compute_dtype):
    """(N, n_tiles, C, 1): prev-tap value for each tile's first output column."""
    n, c = odd_p.shape[0], odd_p.shape[1]
    zero = jnp.zeros((n, c, 1), dtype=odd_p.dtype)        # x[-1] == conv left pad
    if n_tiles > 1:
        cols = odd_p[:, :, lane_tile - 1:(n_tiles - 1) * lane_tile:lane_tile]
        halo = jnp.concatenate([zero, cols], axis=-1)      # (N, C, n_tiles)
    else:
        halo = zero
    halo = jnp.transpose(halo, (0, 2, 1))[..., None]       # (N, n_tiles, C, 1)
    return halo.astype(compute_dtype)


@functools.partial(jax.jit,
                   static_argnames=("compute_dtype", "out_dtype", "lane_tile_max"))
def residual_block_forward(x, params, *, compute_dtype=jnp.float32,
                           out_dtype=None, lane_tile_max=1024):
    if out_dtype is None:
        out_dtype = compute_dtype
    n, c_in, l = x.shape
    out_ch = params['wr'].shape[0]
    if out_ch != N_BRANCH:
        raise ValueError(
            f"residual out_ch must be {N_BRANCH} (= 3*32) to match the concatenated "
            f"branches, got {out_ch}")
    l_out = (l - 1) // 2 + 1

    lane_tile = _pick_lane_tile(l_out, lane_tile_max, n)
    n_tiles = pl.cdiv(l_out, lane_tile)

    planes = _split_even_odd(x, l_out, compute_dtype)               # (N, 2, C, L_out)
    halo = _build_halo(planes[:, 1], lane_tile, n_tiles, compute_dtype)
    w, shifts = _build_block_weights(params, compute_dtype)

    grid = (n, n_tiles)
    out = pl.pallas_call(
        _residual_block_kernel,
        out_shape=jax.ShapeDtypeStruct((n, out_ch, l_out), out_dtype),
        grid=grid,
        in_specs=[
            pl.BlockSpec((None, 2, c_in, lane_tile), lambda b, t: (b, 0, 0, t)),
            pl.BlockSpec((None, None, c_in, 1), lambda b, t: (b, t, 0, 0)),
            pl.BlockSpec((N_WROWS, c_in), lambda b, t: (0, 0)),
            pl.BlockSpec((N_MAIN, 1), lambda b, t: (0, 0)),
        ],
        out_specs=pl.BlockSpec((None, out_ch, lane_tile), lambda b, t: (b, 0, t)),
        compiler_params=pltpu.CompilerParams(
            dimension_semantics=("parallel", "parallel"),
            vmem_limit_bytes=32 * 1024 * 1024,   # fits v5e/v6e (128 MiB) & v7x (64 MiB)
        ),
    )(planes, halo, w, shifts)
    return out


# --------------------------- Pure-JAX reference ----------------------------- #
def conv1d_ref(x, w, b, stride, padding):
    y = jax.lax.conv_general_dilated(
        x, w, window_strides=(stride,), padding=[(padding, padding)],
        dimension_numbers=('NCH', 'OIH', 'NCH'))
    return y + b[None, :, None]


def bn_ref(x, gamma, beta, mean, var):
    return (x - mean[None, :, None]) / jnp.sqrt(var[None, :, None] + EPS) \
        * gamma[None, :, None] + beta[None, :, None]


def residual_block_ref(x, p):
    res = bn_ref(conv1d_ref(x, p['wr'], p['br'], 2, 0), *p['bnr'])
    b1 = jax.nn.relu(bn_ref(conv1d_ref(x, p['w1'], p['b1'], 2, 0), *p['bn1']))
    b2 = jax.nn.relu(bn_ref(conv1d_ref(x, p['w2'], p['b2'], 2, 1), *p['bn2']))
    b3 = jax.nn.relu(bn_ref(conv1d_ref(x, p['w3'], p['b3'], 2, 0), *p['bn3']))
    concat = jnp.concatenate([b1, b2, b3], axis=1)
    return jax.nn.relu(concat + res)


# --------------------------------- Setup ------------------------------------ #
def init_params(key, in_ch, out_ch):
    ks = jax.random.split(key, 16)

    def bn_init(k, c):
        k1, k2, k3, k4 = jax.random.split(k, 4)
        gamma = jax.random.uniform(k1, (c,), minval=0.5, maxval=1.5)
        beta = 0.1 * jax.random.normal(k2, (c,))
        mean = 0.1 * jax.random.normal(k3, (c,))
        var = jax.random.uniform(k4, (c,), minval=0.5, maxval=1.5)
        return (gamma.astype(jnp.float32), beta.astype(jnp.float32),
                mean.astype(jnp.float32), var.astype(jnp.float32))

    return {
        'w1': 0.3 * jax.random.normal(ks[0], (BRANCH_CH, in_ch, 1), jnp.float32),
        'b1': 0.1 * jax.random.normal(ks[1], (BRANCH_CH,), jnp.float32),
        'w2': 0.3 * jax.random.normal(ks[2], (BRANCH_CH, in_ch, 3), jnp.float32),
        'b2': 0.1 * jax.random.normal(ks[3], (BRANCH_CH,), jnp.float32),
        'w3': 0.3 * jax.random.normal(ks[4], (BRANCH_CH, in_ch, 1), jnp.float32),
        'b3': 0.1 * jax.random.normal(ks[5], (BRANCH_CH,), jnp.float32),
        'wr': 0.3 * jax.random.normal(ks[6], (out_ch, in_ch, 1), jnp.float32),
        'br': 0.1 * jax.random.normal(ks[7], (out_ch,), jnp.float32),
        'bn1': bn_init(ks[8], BRANCH_CH),
        'bn2': bn_init(ks[9], BRANCH_CH),
        'bn3': bn_init(ks[10], BRANCH_CH),
        'bnr': bn_init(ks[11], out_ch),
    }


if __name__ == "__main__":
    key = jax.random.PRNGKey(0)
    k_x, k_p, k_x2, k_p2 = jax.random.split(key, 4)

    # --- Config A: tiny + odd length (exercises the zero "next" tap at the end) ---
    n, c_in, length = 2, 8, 63                # L_out = 32, single full-length tile
    x = jax.random.normal(k_x, (n, c_in, length), dtype=jnp.float32)
    params = init_params(k_p, c_in, N_BRANCH)

    out = jax.block_until_ready(residual_block_forward(x, params))
    ref = jax.block_until_ready(residual_block_ref(x, params))
    assert out.shape == ref.shape == (n, N_BRANCH, (length - 1) // 2 + 1), out.shape
    if not jnp.allclose(out, ref, atol=1e-3, rtol=1e-3):
        raise AssertionError("Pallas kernel (f32, tiny) does not match reference")

    # --- Config B: real backbone shape (96 -> 96), grid=(2, 2), cross-tile halo ---
    # L=4096 -> L_out=2048 -> two 1024-lane tiles per batch element.
    n2, c_in2, length2 = 2, 96, 4096
    x2 = jax.random.normal(k_x2, (n2, c_in2, length2), dtype=jnp.float32)
    params2 = init_params(k_p2, c_in2, N_BRANCH)

    out2 = jax.block_until_ready(residual_block_forward(x2, params2))
    ref2 = jax.block_until_ready(residual_block_ref(x2, params2))
    assert out2.shape == ref2.shape
    # Loose tolerance: XLA's conv and the MXU dot may use different f32 matmul
    # pass counts; structural bugs (e.g. a wrong halo column) produce O(1) errors
    # and are still caught.
    if not jnp.allclose(out2, ref2, atol=1e-1, rtol=1e-2):
        raise AssertionError("Pallas kernel (f32, tiled) does not match reference")

    # --- bf16 compute + bf16 output path (v6e / v7x MXU), f32 accumulation ---
    out2_bf16 = jax.block_until_ready(
        residual_block_forward(x2, params2, compute_dtype=jnp.bfloat16))
    assert out2_bf16.dtype == jnp.bfloat16
    if not jnp.allclose(out2_bf16.astype(jnp.float32), ref2, atol=2e-1, rtol=2e-1):
        raise AssertionError("Pallas kernel (bf16) does not match reference")

    print("KERNEL_OK")
</pallas_src>

<mosaic_0001>
module attributes {stable_mosaic.version = 11 : i64} {
  func.func @_residual_block_kernel(%arg0: i32, %arg1: i32, %arg2: memref<1x2x8x32xf32, #tpu.memory_space<vmem>>, %arg3: memref<1x1x8x1xf32, #tpu.memory_space<vmem>>, %arg4: memref<256x8xf32, #tpu.memory_space<vmem>>, %arg5: memref<192x1xf32, #tpu.memory_space<vmem>>, %arg6: memref<1x96x32xf32, #tpu.memory_space<vmem>>) attributes {dimension_semantics = [#tpu.dimension_semantics<parallel>, #tpu.dimension_semantics<parallel>], iteration_bounds = array<i64: 2, 1>, scalar_prefetch = 0 : i64, scratch_operands = 0 : i64, tpu.core_type = #tpu.core_type<tc>, window_params = [{transform_indices = @transform_0, window_bounds = array<i64: 1, 2, 8, 32>}, {transform_indices = @transform_1, window_bounds = array<i64: 1, 1, 8, 1>}, {pipeline_mode = #tpu.pipeline_mode<synchronous>, transform_indices = @transform_2, window_bounds = array<i64: 256, 8>}, {pipeline_mode = #tpu.pipeline_mode<synchronous>, transform_indices = @transform_3, window_bounds = array<i64: 192, 1>}, {transform_indices = @transform_4, window_bounds = array<i64: 1, 96, 32>}]} {
    %c0 = arith.constant 0 : index
    %c0_0 = arith.constant 0 : index
    %c0_1 = arith.constant 0 : index
    %c0_2 = arith.constant 0 : index
    %0 = vector.load %arg2[%c0, %c0_0, %c0_1, %c0_2] : memref<1x2x8x32xf32, #tpu.memory_space<vmem>>, vector<1x1x8x32xf32>
    %1 = vector.shape_cast %0 : vector<1x1x8x32xf32> to vector<8x32xf32>
    %c0_3 = arith.constant 0 : index
    %c1 = arith.constant 1 : index
    %c0_4 = arith.constant 0 : index
    %c0_5 = arith.constant 0 : index
    %2 = vector.load %arg2[%c0_3, %c1, %c0_4, %c0_5] : memref<1x2x8x32xf32, #tpu.memory_space<vmem>>, vector<1x1x8x32xf32>
    %3 = vector.shape_cast %2 : vector<1x1x8x32xf32> to vector<8x32xf32>
    %c1_i32 = arith.constant 1 : i32
    %4 = tpu.dynamic_rotate %3 by %c1_i32 dim 1 : vector<8x32xf32>, i32 -> vector<8x32xf32>
    %5 = tpu.iota {dimensions = array<i32: 1>} : vector<8x32xi32>
    %c0_i32 = arith.constant 0 : i32
    %6 = vector.broadcast %c0_i32 : i32 to vector<8x32xi32>
    %7 = arith.cmpi eq, %5, %6 : vector<8x32xi32>
    %c0_6 = arith.constant 0 : index
    %c0_7 = arith.constant 0 : index
    %c0_8 = arith.constant 0 : index
    %c0_9 = arith.constant 0 : index
    %8 = vector.load %arg3[%c0_6, %c0_7, %c0_8, %c0_9] : memref<1x1x8x1xf32, #tpu.memory_space<vmem>>, vector<1x1x8x1xf32>
    %9 = vector.shape_cast %8 : vector<1x1x8x1xf32> to vector<8x1xf32>
    %10 = vector.shape_cast %9 : vector<8x1xf32> to vector<8x1xf32>
    %11 = vector.broadcast %10 : vector<8x1xf32> to vector<8x32xf32>
    %12 = arith.select %7, %11, %4 : vector<8x32xi1>, vector<8x32xf32>
    %c0_10 = arith.constant 0 : index
    %c0_11 = arith.constant 0 : index
    %13 = vector.load %arg4[%c0_10, %c0_11] : memref<256x8xf32, #tpu.memory_space<vmem>>, vector<192x8xf32>
    %cst = arith.constant dense<0.000000e+00> : vector<192x32xf32>
    %14 = tpu.matmul %13, %1, %cst {dimension_numbers = #tpu.dot_dimension_numbers<[1], [0], [0], [1], [0, 0, 1, 1], [], []>} : vector<192x8xf32>, vector<8x32xf32>, vector<192x32xf32> -> vector<192x32xf32>
    %c0_12 = arith.constant 0 : index
    %c0_13 = arith.constant 0 : index
    %15 = vector.load %arg5[%c0_12, %c0_13] : memref<192x1xf32, #tpu.memory_space<vmem>>, vector<192x1xf32>
    %16 = vector.broadcast %15 : vector<192x1xf32> to vector<192x32xf32>
    %17 = arith.addf %14, %16 : vector<192x32xf32>
    %c192 = arith.constant 192 : index
    %c0_14 = arith.constant 0 : index
    %18 = vector.load %arg4[%c192, %c0_14] : memref<256x8xf32, #tpu.memory_space<vmem>>, vector<32x8xf32>
    %cst_15 = arith.constant dense<0.000000e+00> : vector<32x32xf32>
    %19 = tpu.matmul %18, %12, %cst_15 {dimension_numbers = #tpu.dot_dimension_numbers<[1], [0], [0], [1], [0, 0, 1, 1], [], []>} : vector<32x8xf32>, vector<8x32xf32>, vector<32x32xf32> -> vector<32x32xf32>
    %c224 = arith.constant 224 : index
    %c0_16 = arith.constant 0 : index
    %20 = vector.load %arg4[%c224, %c0_16] : memref<256x8xf32, #tpu.memory_space<vmem>>, vector<32x8xf32>
    %cst_17 = arith.constant dense<0.000000e+00> : vector<32x32xf32>
    %21 = tpu.matmul %20, %3, %cst_17 {dimension_numbers = #tpu.dot_dimension_numbers<[1], [0], [0], [1], [0, 0, 1, 1], [], []>} : vector<32x8xf32>, vector<8x32xf32>, vector<32x32xf32> -> vector<32x32xf32>
    %22 = arith.addf %19, %21 : vector<32x32xf32>
    %23 = vector.extract_strided_slice %17 {offsets = [0, 0], sizes = [32, 32], strides = [1, 1]} : vector<192x32xf32> to vector<32x32xf32>
    %cst_18 = arith.constant 0.000000e+00 : f32
    %24 = vector.broadcast %cst_18 : f32 to vector<32x32xf32>
    %25 = arith.maximumf %23, %24 : vector<32x32xf32>
    %26 = vector.extract_strided_slice %17 {offsets = [32, 0], sizes = [32, 32], strides = [1, 1]} : vector<192x32xf32> to vector<32x32xf32>
    %27 = arith.addf %26, %22 : vector<32x32xf32>
    %cst_19 = arith.constant 0.000000e+00 : f32
    %28 = vector.broadcast %cst_19 : f32 to vector<32x32xf32>
    %29 = arith.maximumf %27, %28 : vector<32x32xf32>
    %30 = vector.extract_strided_slice %17 {offsets = [64, 0], sizes = [32, 32], strides = [1, 1]} : vector<192x32xf32> to vector<32x32xf32>
    %cst_20 = arith.constant 0.000000e+00 : f32
    %31 = vector.broadcast %cst_20 : f32 to vector<32x32xf32>
    %32 = arith.maximumf %30, %31 : vector<32x32xf32>
    %33 = vector.extract_strided_slice %17 {offsets = [96, 0], sizes = [96, 32], strides = [1, 1]} : vector<192x32xf32> to vector<96x32xf32>
    %34 = vector.extract_strided_slice %33 {offsets = [0, 0], sizes = [32, 32], strides = [1, 1]} : vector<96x32xf32> to vector<32x32xf32>
    %35 = arith.addf %25, %34 : vector<32x32xf32>
    %cst_21 = arith.constant 0.000000e+00 : f32
    %36 = vector.broadcast %cst_21 : f32 to vector<32x32xf32>
    %37 = arith.maximumf %35, %36 : vector<32x32xf32>
    %c0_22 = arith.constant 0 : index
    %c0_23 = arith.constant 0 : index
    %c0_24 = arith.constant 0 : index
    %38 = vector.load %arg6[%c0_22, %c0_23, %c0_24] : memref<1x96x32xf32, #tpu.memory_space<vmem>>, vector<1x32x32xf32>
    %39 = vector.shape_cast %38 : vector<1x32x32xf32> to vector<32x32xf32>
    %40 = vector.shape_cast %37 : vector<32x32xf32> to vector<1x32x32xf32>
    tpu.vector_store %arg6[%c0_22, %c0_23, %c0_24], %40 {strides = array<i32>} : memref<1x96x32xf32, #tpu.memory_space<vmem>>, vector<1x32x32xf32>,
    %41 = vector.extract_strided_slice %33 {offsets = [32, 0], sizes = [32, 32], strides = [1, 1]} : vector<96x32xf32> to vector<32x32xf32>
    %42 = arith.addf %29, %41 : vector<32x32xf32>
    %cst_25 = arith.constant 0.000000e+00 : f32
    %43 = vector.broadcast %cst_25 : f32 to vector<32x32xf32>
    %44 = arith.maximumf %42, %43 : vector<32x32xf32>
    %c0_26 = arith.constant 0 : index
    %c32 = arith.constant 32 : index
    %c0_27 = arith.constant 0 : index
    %45 = vector.load %arg6[%c0_26, %c32, %c0_27] : memref<1x96x32xf32, #tpu.memory_space<vmem>>, vector<1x32x32xf32>
    %46 = vector.shape_cast %45 : vector<1x32x32xf32> to vector<32x32xf32>
    %47 = vector.shape_cast %44 : vector<32x32xf32> to vector<1x32x32xf32>
    tpu.vector_store %arg6[%c0_26, %c32, %c0_27], %47 {strides = array<i32>} : memref<1x96x32xf32, #tpu.memory_space<vmem>>, vector<1x32x32xf32>,
    %48 = vector.extract_strided_slice %33 {offsets = [64, 0], sizes = [32, 32], strides = [1, 1]} : vector<96x32xf32> to vector<32x32xf32>
    %49 = arith.addf %32, %48 : vector<32x32xf32>
    %cst_28 = arith.constant 0.000000e+00 : f32
    %50 = vector.broadcast %cst_28 : f32 to vector<32x32xf32>
    %51 = arith.maximumf %49, %50 : vector<32x32xf32>
    %c0_29 = arith.constant 0 : index
    %c64 = arith.constant 64 : index
    %c0_30 = arith.constant 0 : index
    %52 = vector.load %arg6[%c0_29, %c64, %c0_30] : memref<1x96x32xf32, #tpu.memory_space<vmem>>, vector<1x32x32xf32>
    %53 = vector.shape_cast %52 : vector<1x32x32xf32> to vector<32x32xf32>
    %54 = vector.shape_cast %51 : vector<32x32xf32> to vector<1x32x32xf32>
    tpu.vector_store %arg6[%c0_29, %c64, %c0_30], %54 {strides = array<i32>} : memref<1x96x32xf32, #tpu.memory_space<vmem>>, vector<1x32x32xf32>,
    return
  }
  func.func @transform_0(%arg0: i32, %arg1: i32) -> (i32, i32, i32, i32) {
    %c0_i32 = arith.constant 0 : i32
    %c0_i32_0 = arith.constant 0 : i32
    %c0_i32_1 = arith.constant 0 : i32
    return %arg0, %c0_i32, %c0_i32_0, %arg1 : i32, i32, i32, i32
  }
  func.func @transform_1(%arg0: i32, %arg1: i32) -> (i32, i32, i32, i32) {
    %c0_i32 = arith.constant 0 : i32
    %c0_i32_0 = arith.constant 0 : i32
    %c0_i32_1 = arith.constant 0 : i32
    return %arg0, %arg1, %c0_i32, %c0_i32_0 : i32, i32, i32, i32
  }
  func.func @transform_2(%arg0: i32, %arg1: i32) -> (i32, i32) {
    %c0_i32 = arith.constant 0 : i32
    %c0_i32_0 = arith.constant 0 : i32
    %c0_i32_1 = arith.constant 0 : i32
    return %c0_i32, %c0_i32_0 : i32, i32
  }
  func.func @transform_3(%arg0: i32, %arg1: i32) -> (i32, i32) {
    %c0_i32 = arith.constant 0 : i32
    %c0_i32_0 = arith.constant 0 : i32
    %c0_i32_1 = arith.constant 0 : i32
    return %c0_i32, %c0_i32_0 : i32, i32
  }
  func.func @transform_4(%arg0: i32, %arg1: i32) -> (i32, i32, i32) {
    %c0_i32 = arith.constant 0 : i32
    %c0_i32_0 = arith.constant 0 : i32
    return %arg0, %c0_i32, %arg1 : i32, i32, i32
  }
}

</mosaic_0001>

<bundles_post_ra>
// kernel: residual_block_forward.1
= control target key start
LH: loop header
LB: loop body
LE: loop exit
PB: predicated region body
PF: predicated region fallthrough
CT: control target
= control target key end

     0   :  { %s983_s15 = smov 0   ;;  %s985_s16 = smov 0   ;;  %s1287_s0 = inlined_call_operand.vmem [shape: f32[2,2,8,32], index: 0, kind: input, shape index: {}]   ;;  %s1288_s1 = inlined_call_operand.vmem [shape: f32[2,1,8,1], index: 1, kind: input, shape index: {}]   ;;  %s1289_s2 = inlined_call_operand.vmem [shape: f32[256,8], index: 2, kind: input, shape index: {}]   ;;  %s1290_s3 = inlined_call_operand.vmem [shape: f32[192,1], index: 3, kind: input, shape index: {}]   ;;  %s1291_s4 = inlined_call_operand.vmem [shape: f32[2,96,32], index: 4, kind: output, shape index: {}]  }
   0x1   :  { %s987_s17 = smov 0  }
   0x2 LB: > { %s26_s18 = sadd.s32 1, %s949_s16  ;;  %p856_p0 = scmp.ge.s32.totalorder %s953_s17, 1  ;;  %s953_s17 = sphi %s987_s17, %s14_s17   ;;  %s949_s16 = sphi %s985_s16, %s1293_s16   ;;  %s945_s15 = sphi %s983_s15, %s1292_s15  }
   0x3   : > { %p28_p1 = scmp.ge.s32.totalorder %s26_s18, 2  ;;  %p195_p2 = scmp.lt.s32.totalorder %s953_s17, 3 }
   0x5   : > { %s1295_s18 = smov (%p28_p1, %s26_s18), 0  ;;  %p196_p3 = pnand %p856_p0, %p195_p2 }
   0x6   : > { %p234_p4 = scmp.lt.s32.totalorder (!%p196_p3), %s945_s15, 1  ;;  %s955_s23 = smov (!%p196_p3), 32  }
   0x7   : > { %199 = sbr.rel (%p196_p3) target bundleno = 532 (0x214), region = 36  ;;  %s957_s11 = smov (!%p196_p3), 97  }
   0xc   : > { %s1297_s15 = smov (!%p234_p4, %s945_s15), 1  ;;  %v281_v2 = vld [vmem:[%s1289_s2] sm:$0xff]  ;;  %vm449_vm0 = vcmask 64512   ;;  %v956_v5 = vmov 0   ;;  %v282_v9 = vld [vmem:[%s1289_s2 + $0x8] sm:$0xff]  ;;  %v283_v12 = vld [vmem:[%s1289_s2 + $0x10] sm:$0xff] }
   0xd   : > { %s896_s19 = sshll.u32 %s1297_s15, 4  ;;  %s859_s24 = sshll.u32 %s1297_s15, 3  ;;  %v293_v3 = vld [vmem:[%s1289_s2 + $0x60] sm:$0xff]  ;;  %929 = vset.pattern.permute.xlu2 %v956_v5  ;;  %928 = vset.pattern.permute.xlu1 %v956_v5  ;;  %v294_v10 = vld [vmem:[%s1289_s2 + $0x68] sm:$0xff]  ;;  %v295_v13 = vld [vmem:[%s1289_s2 + $0x70] sm:$0xff]  ;;  %vm260_vm1 = vcmask 1047808  }
   0xe   : > { %s241_s22 = scalar_lea.vmem %s1287_s0, %s896_s19  ;;  %s248_s5 = scalar_lea.vmem %s1288_s1, %s859_s24  ;;  %v305_v4 = vld [vmem:[%s1290_s3] sm:$0xff]  ;;  %930 = vset.pattern.permute.xlu0 %v956_v5  ;;  %v306_v11 = vld [vmem:[%s1290_s3 + $0x8] sm:$0xff]  ;;  %v284_v14 = vld [vmem:[%s1289_s2 + $0x18] sm:$0xff]  ;;  %vm725_vm2 = vcmask 261120  }
   0xf   : > { %v1007_v0 = vld [vmem:[%s241_s22 + $0x8] sm:$0xff]  ;;  %v257_v1 = vld [vmem:[%s241_s22] sm:$0xff]  ;;  %331 = vperm.xlu2 %929, %v305_v4   ;;  %v296_v15 = vld [vmem:[%s1289_s2 + $0x78] sm:$0xff]  ;;  %s900_s10 = smul.u32 96, %s1297_s15 }
  0x10   : > { %261 = vrot.lane.b32.xlu0 %v1007_v0, %s955_s23  ;;  %537 = vmatpush.msra.mxu0 %v257_v1  ;;  %v297_v6 = vld [vmem:[%s1289_s2 + $0x80] sm:$0xff]  ;;  %v298_v19 = vld [vmem:[%s1289_s2 + $0x88] sm:$0xff]  ;;  %v299_v23 = vld [vmem:[%s1289_s2 + $0x90] sm:$0xff] }
  0x11   : > { %898 = vmatpush.msra.mxu2 %v257_v1  ;;  %862 = vmatmul.msk.f32.vlgmr.msra.gmra.mxu0 %vm449_vm0, %v281_v2  ;;  %v270_v7 = vld [vmem:[%s248_s5] sm:$0xff]  ;;  %v286_v21 = vld [vmem:[%s1289_s2 + $0x28] sm:$0xff]  ;;  %v311_v24 = vld [vmem:[%s1290_s3 + $0x30] sm:$0xff]  ;;  %s1198_s13 = scalar_lea.vmem %s1291_s4, %s900_s10 }
  0x12   : > { %874 = vmatmul.msk.f32.vlgmr.msra.gmra.mxu2 %vm449_vm0, %v293_v3  ;;  %899 = vmatpush.msra.mxu3 %v257_v1  ;;  %v289_v8 = vld [vmem:[%s1289_s2 + $0x40] sm:$0xff]  ;;  %v290_v22 = vld [vmem:[%s1289_s2 + $0x48] sm:$0xff]  ;;  %v291_v25 = vld [vmem:[%s1289_s2 + $0x50] sm:$0xff] }
  0x13   : > { %878 = vmatmul.msk.f32.vlgmr.msra.gmra.mxu3 %vm449_vm0, %v297_v6  ;;  %273 = vperm.xlu1 %928, %v270_v7   ;;  %v285_v18 = vld [vmem:[%s1289_s2 + $0x20] sm:$0xff]  ;;  %v300_v26 = vld [vmem:[%s1289_s2 + $0x98] sm:$0xff]  ;;  %v314_v27 = vld [vmem:[%s1290_s3 + $0x48] sm:$0xff] }
  0x14   : > { %897 = vmatpush.msra.mxu1 %v257_v1  ;;  %v309_v20 = vld [vmem:[%s1290_s3 + $0x20] sm:$0xff]  ;;  %v292_v28 = vld [vmem:[%s1289_s2 + $0x58] sm:$0xff]  ;;  %v302_v31 = vld [vmem:[%s1289_s2 + $0xa8] sm:$0xff] }
  0x15   : > { %870 = vmatmul.msk.f32.vlgmr.msra.gmra.mxu1 %vm449_vm0, %v289_v8  ;;  %v301_v29 = vld [vmem:[%s1289_s2 + $0xa0] sm:$0xff]  ;;  %v320_v34 = vld [vmem:[%s1290_s3 + $0x78] sm:$0xff]  ;;  %v307_v35 = vld [vmem:[%s1290_s3 + $0x10] sm:$0xff] }
  0x16   : > { %646 = vmatpush.msrb.mxu1 %v1007_v0  ;;  %v317_v30 = vld [vmem:[%s1290_s3 + $0x60] sm:$0xff]  ;;  %v303_v36 = vld [vmem:[%s1289_s2 + $0xb0] sm:$0xff]  ;;  %v308_v37 = vld [vmem:[%s1290_s3 + $0x18] sm:$0xff] }
  0x17   : > { %336 = vperm.xlu2 %929, %v306_v11   ;;  %v304_v38 = vld [vmem:[%s1289_s2 + $0xb8] sm:$0xff]  ;;  %v310_v39 = vld [vmem:[%s1290_s3 + $0x28] sm:$0xff]  ;;  %v313_v40 = vld [vmem:[%s1290_s3 + $0x40] sm:$0xff]  ;;  %v267_v11 = vlaneseq }
  0x18   : > { %v316_v41 = vld [vmem:[%s1290_s3 + $0x58] sm:$0xff]  ;;  %v319_v45 = vld [vmem:[%s1290_s3 + $0x70] sm:$0xff]  ;;  %v322_v50 = vld [vmem:[%s1290_s3 + $0x88] sm:$0xff] }
  0x19   : > { %863 = vmatmul.msk.f32.gmra.mxu0 %vm449_vm0, %v282_v9  ;;  %v312_v44 = vld [vmem:[%s1290_s3 + $0x38] sm:$0xff]  ;;  %v315_v49 = vld [vmem:[%s1290_s3 + $0x50] sm:$0xff]  ;;  %v325_v51 = vld [vmem:[%s1290_s3 + $0xa0] sm:$0xff] }
  0x1a   : > { %875 = vmatmul.msk.f32.gmra.mxu2 %vm449_vm0, %v294_v10  ;;  %v287_v52 = vld [vmem:[%s1289_s2 + $0x30] sm:$0xff]  ;;  %v318_v53 = vld [vmem:[%s1290_s3 + $0x68] sm:$0xff]  ;;  %v328_v55 = vld [vmem:[%s1290_s3 + $0xb8] sm:$0xff] }
  0x1b   : > { %879 = vmatmul.msk.f32.gmra.mxu3 %vm449_vm0, %v298_v19  ;;  %v321_v56 = vld [vmem:[%s1290_s3 + $0x80] sm:$0xff]  ;;  %v288_v58 = vld [vmem:[%s1289_s2 + $0x38] sm:$0xff]  ;;  %v323_v62 = vld [vmem:[%s1290_s3 + $0x90] sm:$0xff] }
  0x1c   : > { %v324_v59 = vld [vmem:[%s1290_s3 + $0x98] sm:$0xff]  ;;  %v327_v63 = vld [vmem:[%s1290_s3 + $0xb0] sm:$0xff]  ;;  %v326_v6 = vld [vmem:[%s1290_s3 + $0xa8] sm:$0xff] }
  0x1d   : > { %871 = vmatmul.msk.f32.gmra.mxu1 %vm449_vm0, %v290_v22  ;;  %v615_v7 = vld [vmem:[%s1289_s2 + $0xe0] sm:$0xff]  ;;  %v616_v8 = vld [vmem:[%s1289_s2 + $0xe8] sm:$0xff]  ;;  %v618_v19 = vld [vmem:[%s1289_s2 + $0xf8] sm:$0xff] }
  0x1f   : > { %351 = vperm.xlu2 %929, %v309_v20  }
  0x21   : > { %864 = vmatmul.msk.f32.gmra.mxu0 %vm449_vm0, %v283_v12 }
  0x22   : > { %876 = vmatmul.msk.f32.gmra.mxu2 %vm449_vm0, %v295_v13  ;;  %v617_v13 = vld [vmem:[%s1289_s2 + $0xf0] sm:$0xff] }
  0x23   : > { %880 = vmatmul.msk.f32.gmra.mxu3 %vm449_vm0, %v299_v23 }
  0x25   : > { %872 = vmatmul.msk.f32.gmra.mxu1 %vm449_vm0, %v291_v25 }
  0x27   : > { %361 = vperm.xlu2 %929, %v311_v24  }
  0x29   : > { %865 = vmatmul.msk.f32.gmra.mxu0 %vm449_vm0, %v284_v14  ;;  %v268_v14 = vand.u32 127, %v267_v11 }
  0x2a   : > { %877 = vmatmul.msk.f32.gmra.mxu2 %vm449_vm0, %v296_v15 }
  0x2b   : > { %881 = vmatmul.msk.f32.gmra.mxu3 %vm449_vm0, %v300_v26  ;;  %vm269_vm3 = vcmp.eq.s32.totalorder %v268_v14, 0  ;;  %v612_v26 = vld [vmem:[%s1289_s2 + $0xc8] sm:$0xff] }
  0x2d   : > { %873 = vmatmul.msk.f32.gmra.mxu1 %vm449_vm0, %v292_v28 }
  0x2f   : > { %376 = vperm.xlu2 %929, %v314_v27  }
  0x31   : > { %866 = vmatmul.msk.f32.gmra.mxu0 %vm449_vm0, %v285_v18  ;;  %v611_v18 = vld [vmem:[%s1289_s2 + $0xc0] sm:$0xff] }
  0x33   : > { %882 = vmatmul.msk.f32.gmra.mxu3 %vm449_vm0, %v301_v29 }
  0x35   : > { %886 = vmatmul.msk.f32.vlgmr.msrb.gmra.mxu1 %vm449_vm0, %v615_v7 }
  0x37   : > { %391 = vperm.xlu2 %929, %v317_v30  }
  0x39   : > { %867 = vmatmul.msk.f32.gmra.mxu0 %vm449_vm0, %v286_v21 }
  0x3b   : > { %883 = vmatmul.msk.f32.gmra.mxu3 %vm449_vm0, %v302_v31 }
  0x3d   : > { %887 = vmatmul.msk.f32.gmra.mxu1 %vm449_vm0, %v616_v8 }
  0x3f   : > { %406 = vperm.xlu2 %929, %v320_v34   ;;  %v613_v34 = vld [vmem:[%s1289_s2 + $0xd0] sm:$0xff] }
  0x41   : > { %868 = vmatmul.msk.f32.gmra.mxu0 %vm449_vm0, %v287_v52 }
  0x43   : > { %884 = vmatmul.msk.f32.gmra.mxu3 %vm449_vm0, %v303_v36 }
  0x45   : > { %888 = vmatmul.msk.f32.gmra.mxu1 %vm449_vm0, %v617_v13 }
  0x47   : > { %421 = vperm.xlu2 %929, %v323_v62  }
  0x49   : > { %869 = vmatmul.msk.f32.gmra.mxu0 %vm449_vm0, %v288_v58 }
  0x4b   : > { %885 = vmatmul.msk.f32.gmra.mxu3 %vm449_vm0, %v304_v38 }
  0x4d   : > { %889 = vmatmul.msk.f32.gmra.mxu1 %vm449_vm0, %v618_v19 }
  0x4f   : > { %436 = vperm.xlu2 %929, %v326_v6  }
  0x69   : > { %v332_v42 = vpop.permute.xlu2 %331 }
  0x71   : > { %v337_v46 = vpop.permute.xlu2 %336 }
  0x79   : > { %v1169_v54 = vpop.permute.xlu2 %351 }
  0x81   : > { %v1177_v57 = vpop.permute.xlu2 %361 }
  0x82   : > { %v262_v16 = vpop.permute.xlu0 %261 }
  0x83   : > { %v263_v17 = vsel %vm260_vm1, %v262_v16, %v1007_v0 }
  0x84   : > { %264 = vrot.lane.b32.xlu0 %v263_v17, %s955_s23 }
  0x85   : > { %v274_v10 = vpop.permute.xlu1 %273 }
  0x89   : > { %v1186_v60 = vpop.permute.xlu2 %376 }
  0x8c   : > { %341 = vperm.xlu0 %930, %v307_v35  }
  0x8e   : > { %v539_v43 = vpop.f32.mrf.mxu0 }
  0x8f   : > { %v540_v61 = vadd.f32 %v539_v43, %v332_v42 }
  0x91   : > { %v392_v2 = vpop.permute.xlu2 %391 }
  0x92   : > { %v563_v38 = vpop.f32.mrf.mxu1 }
  0x94   : > { %366 = vperm.xlu0 %930, %v312_v44  }
  0x95   : > { %v575_v1 = vpop.f32.mrf.mxu2 }
  0x96   : > { %v542_v47 = vpop.f32.mrf.mxu0  ;;  %v576_v3 = vadd.f32 %v575_v1, %v392_v2  ;;  %v1215_v12 = vpop.f32.mrf.mxu3 }
  0x97   : > { %v1151_v48 = vadd.f32 %v542_v47, %v337_v46 }
  0x99   : > { %v407_v22 = vpop.permute.xlu2 %406  ;;  %v702_v62 = vmax.f32 %v1151_v48, 0.0 }
  0x9a   : > { %v566_v43 = vpop.f32.mrf.mxu1 }
  0x9b   : > { %v567_v7 = vadd.f32 %v566_v43, %v1186_v60 }
  0x9c   : > { %381 = vperm.xlu0 %930, %v315_v49  }
  0x9d   : > { %v1213_v9 = vpop.f32.mrf.mxu2 }
  0x9e   : > { %v545_v16 = vpop.f32.mrf.mxu0  ;;  %v590_v21 = vpop.f32.mrf.mxu3 }
  0xa1   : > { %v422_v2 = vpop.permute.xlu2 %421 }
  0xa2   : > { %v569_v52 = vpop.f32.mrf.mxu1 }
  0xa4   : > { %396 = vperm.xlu0 %930, %v318_v53  }
  0xa5   : > { %v581_v15 = vpop.f32.mrf.mxu2 }
  0xa6   : > { %v548_v24 = vpop.f32.mrf.mxu0  ;;  %v593_v30 = vpop.f32.mrf.mxu3 }
  0xac   : > { %411 = vperm.xlu0 %930, %v321_v56  }
  0xad   : > { %v584_v23 = vpop.f32.mrf.mxu2 }
  0xae   : > { %v585_v28 = vadd.f32 %v584_v23, %v407_v22  ;;  %v1241_v35 = vpop.f32.mrf.mxu3 }
  0xb4   : > { %426 = vperm.xlu0 %930, %v324_v59  }
  0xbc   : > { %441 = vperm.xlu0 %930, %v327_v63  }
  0xf6   : > { %v265_v32 = vpop.permute.xlu0 %264 }
  0xf7   : > { %v266_v33 = vsel %vm260_vm1, %v265_v32, %v1007_v0  ;;  %v701_v0 = vmax.f32 %v540_v61, 0.0 }
  0xf8   : > { %277 = vrot.lane.b32.xlu1 %v266_v33, %s957_s11 }
  0xf9   : > { %v717_v4 = vadd.f32 %v701_v0, %v576_v3  ;;  %v572_v0 = vpop.f32.mrf.mxu1 }
  0xfb   : > { %v721_v5 = vmax.f32 %v717_v4, 0.0 }
  0xfd   : > { %726 = vst.msk [vmem:[%s1198_s13] sm:$0xff] %vm725_vm2, %v721_v5  ;;  %v594_v5 = vadd.f32 %v593_v30, %v422_v2 }
 0x100   : > { %346 = vperm.xlu1 %928, %v308_v37   ;;  %v614_v37 = vld [vmem:[%s1289_s2 + $0xd8] sm:$0xff] }
 0x101   : > { %v648_v30 = vpop.f32.mrf.mxu1 }
 0x108   : > { %356 = vperm.xlu1 %928, %v310_v39   ;;  %v342_v39 = vpop.permute.xlu0 %341 }
 0x109   : > { %v546_v42 = vadd.f32 %v545_v16, %v342_v39 }
 0x10b   : > { %v703_v44 = vmax.f32 %v546_v42, 0.0 }
 0x110   : > { %371 = vperm.xlu1 %928, %v313_v40  }
 0x118   : > { %386 = vperm.xlu1 %928, %v316_v41   ;;  %v599_v41 = vpop.f32.mrf.mxu3 }
 0x120   : > { %401 = vperm.xlu1 %928, %v319_v45   ;;  %v1247_v45 = vpop.permute.xlu0 %366  ;;  %v602_v49 = vpop.f32.mrf.mxu3 }
 0x128   : > { %416 = vperm.xlu1 %928, %v322_v50   ;;  %v605_v58 = vpop.f32.mrf.mxu3 }
 0x130   : > { %431 = vperm.xlu1 %928, %v325_v51   ;;  %v608_v13 = vpop.f32.mrf.mxu3 }
 0x138   : > { %446 = vperm.xlu1 %928, %v328_v55   ;;  %v382_v55 = vpop.permute.xlu0 %381 }
 0x140   : > { %v397_v3 = vpop.permute.xlu0 %396 }
 0x141   : > { %v579_v6 = vadd.f32 %v1213_v9, %v397_v3 }
 0x143   : > { %v718_v11 = vadd.f32 %v702_v62, %v579_v6 }
 0x145   : > { %v722_v48 = vmax.f32 %v718_v11, 0.0 }
 0x147   : > { %727 = vst.msk [vmem:[%s1198_s13 + $0x8] sm:$0xff] %vm725_vm2, %v722_v48 }
 0x148   : > { %v412_v9 = vpop.permute.xlu0 %411 }
 0x149   : > { %v588_v39 = vadd.f32 %v1215_v12, %v412_v9 }
 0x150   : > { %v427_v23 = vpop.permute.xlu0 %426 }
 0x16a   : > { %v278_v17 = vpop.permute.xlu1 %277 }
 0x16b   : > { %v280_v20 = vsel %vm269_vm3, %v274_v10, %v278_v17 }
 0x16c   : > { %687 = vmatpush.msrb.mxu2 %v280_v20 }
 0x16d   : > { %890 = vmatmul.msk.f32.vlgmr.msrb.gmra.mxu2 %vm449_vm0, %v611_v18  ;;  %v437_v18 = vpop.permute.xlu2 %436 }
 0x16e   : > { %v603_v60 = vadd.f32 %v602_v49, %v437_v18 }
 0x172   : > { %v347_v25 = vpop.permute.xlu1 %346 }
 0x173   : > { %v549_v27 = vadd.f32 %v548_v24, %v347_v25  ;;  %v570_v24 = vadd.f32 %v569_v52, %v382_v55 }
 0x175   : > { %v704_v29 = vmax.f32 %v549_v27, 0.0  ;;  %891 = vmatmul.msk.f32.gmra.mxu2 %vm449_vm0, %v612_v26  ;;  %v715_v25 = vmax.f32 %v570_v24, 0.0  ;;  %v442_v26 = vpop.permute.xlu0 %441 }
 0x176   : > { %v606_v27 = vadd.f32 %v605_v58, %v442_v26 }
 0x177   : > { %v720_v31 = vadd.f32 %v704_v29, %v585_v28 }
 0x178   : > { %v744_v28 = vadd.f32 %v715_v25, %v606_v27 }
 0x179   : > { %v724_v32 = vmax.f32 %v720_v31, 0.0  ;;  %v551_v31 = vpop.f32.mrf.mxu0 }
 0x17a   : > { %v1233_v33 = vpop.permute.xlu1 %356  ;;  %v748_v29 = vmax.f32 %v744_v28, 0.0 }
 0x17b   : > { %729 = vst.msk [vmem:[%s1198_s13 + $0x18] sm:$0xff] %vm725_vm2, %v724_v32 }
 0x17c   : > { %752 = vst.msk [vmem:[%s1198_s13 + $0x50] sm:$0xff] %vm725_vm2, %v748_v29 }
 0x17d   : > { %892 = vmatmul.msk.f32.gmra.mxu2 %vm449_vm0, %v613_v34  ;;  %v552_v34 = vadd.f32 %v551_v31, %v1169_v54 }
 0x182   : > { %v372_v36 = vpop.permute.xlu1 %371 }
 0x183   : > { %v564_v59 = vadd.f32 %v563_v38, %v372_v36 }
 0x185   : > { %893 = vmatmul.msk.f32.gmra.mxu2 %vm449_vm0, %v614_v37  ;;  %v713_v63 = vmax.f32 %v564_v59, 0.0  ;;  %v651_v37 = vpop.f32.mrf.mxu1 }
 0x18a   : > { %v387_v40 = vpop.permute.xlu1 %386 }
 0x18b   : > { %v573_v8 = vadd.f32 %v572_v0, %v387_v40 }
 0x18d   : > { %v716_v16 = vmax.f32 %v573_v8, 0.0 }
 0x192   : > { %v402_v46 = vpop.permute.xlu1 %401 }
 0x193   : > { %v582_v47 = vadd.f32 %v581_v15, %v402_v46  ;;  %v714_v15 = vmax.f32 %v567_v7, 0.0 }
 0x195   : > { %v719_v50 = vadd.f32 %v703_v44, %v582_v47 }
 0x197   : > { %v723_v51 = vmax.f32 %v719_v50, 0.0  ;;  %v654_v50 = vpop.f32.mrf.mxu1 }
 0x199   : > { %728 = vst.msk [vmem:[%s1198_s13 + $0x10] sm:$0xff] %vm725_vm2, %v723_v51 }
 0x19a   : > { %v417_v53 = vpop.permute.xlu1 %416 }
 0x19b   : > { %v591_v56 = vadd.f32 %v590_v21, %v417_v53  ;;  %v743_v21 = vadd.f32 %v714_v15, %v603_v60 }
 0x19d   : > { %v747_v22 = vmax.f32 %v743_v21, 0.0 }
 0x19f   : > { %751 = vst.msk [vmem:[%s1198_s13 + $0x48] sm:$0xff] %vm725_vm2, %v747_v22  ;;  %v657_v62 = vpop.f32.mrf.mxu1 }
 0x1a2   : > { %v432_v61 = vpop.permute.xlu1 %431 }
 0x1a3   : > { %v600_v1 = vadd.f32 %v599_v41, %v432_v61  ;;  %v554_v41 = vpop.f32.mrf.mxu0 }
 0x1a4   : > { %v555_v44 = vadd.f32 %v554_v41, %v1233_v33 }
 0x1a5   : > { %v742_v4 = vadd.f32 %v713_v63, %v600_v1 }
 0x1a7   : > { %v746_v10 = vmax.f32 %v742_v4, 0.0 }
 0x1a9   : > { %750 = vst.msk [vmem:[%s1198_s13 + $0x40] sm:$0xff] %vm725_vm2, %v746_v10 }
 0x1aa   : > { %v447_v14 = vpop.permute.xlu1 %446 }
 0x1ab   : > { %v609_v17 = vadd.f32 %v608_v13, %v447_v14  ;;  %v557_v54 = vpop.f32.mrf.mxu0 }
 0x1ac   : > { %v558_v12 = vadd.f32 %v557_v54, %v1177_v57  ;;  %v597_v57 = vadd.f32 %v1241_v35, %v427_v23 }
 0x1ad   : > { %v745_v19 = vadd.f32 %v716_v16, %v609_v17 }
 0x1af   : > { %v749_v20 = vmax.f32 %v745_v19, 0.0 }
 0x1b1   : > { %753 = vst.msk [vmem:[%s1198_s13 + $0x58] sm:$0xff] %vm725_vm2, %v749_v20 }
 0x1b3   : > { %v560_v61 = vpop.f32.mrf.mxu0 }
 0x1b4   : > { %v561_v1 = vadd.f32 %v560_v61, %v1247_v45 }
 0x1f0   : > { %v689_v32 = vpop.f32.mrf.mxu2 }
 0x1f1   : > { %v690_v36 = vadd.f32 %v689_v32, %v648_v30 }
 0x1f3   : > { %v705_v38 = vadd.f32 %v690_v36, %v552_v34 }
 0x1f5   : > { %v709_v40 = vmax.f32 %v705_v38, 0.0 }
 0x1f7   : > { %v730_v42 = vadd.f32 %v709_v40, %v588_v39 }
 0x1f8   : > { %v692_v43 = vpop.f32.mrf.mxu2 }
 0x1f9   : > { %v734_v46 = vmax.f32 %v730_v42, 0.0  ;;  %v693_v47 = vadd.f32 %v692_v43, %v651_v37 }
 0x1fb   : > { %738 = vst.msk [vmem:[%s1198_s13 + $0x20] sm:$0xff] %vm725_vm2, %v734_v46  ;;  %v706_v49 = vadd.f32 %v693_v47, %v555_v44 }
 0x1fd   : > { %v710_v51 = vmax.f32 %v706_v49, 0.0 }
 0x1ff   : > { %v731_v52 = vadd.f32 %v710_v51, %v591_v56 }
 0x200   : > { %v695_v53 = vpop.f32.mrf.mxu2 }
 0x201   : > { %v735_v55 = vmax.f32 %v731_v52, 0.0  ;;  %v696_v58 = vadd.f32 %v695_v53, %v654_v50 }
 0x203   : > { %739 = vst.msk [vmem:[%s1198_s13 + $0x28] sm:$0xff] %vm725_vm2, %v735_v55  ;;  %v707_v59 = vadd.f32 %v696_v58, %v558_v12 }
 0x205   : > { %v711_v33 = vmax.f32 %v707_v59, 0.0 }
 0x207   : > { %v732_v63 = vadd.f32 %v711_v33, %v594_v5 }
 0x208   : > { %v698_v0 = vpop.f32.mrf.mxu2 }
 0x209   : > { %v736_v2 = vmax.f32 %v732_v63, 0.0  ;;  %v699_v3 = vadd.f32 %v698_v0, %v657_v62 }
 0x20b   : > { %740 = vst.msk [vmem:[%s1198_s13 + $0x30] sm:$0xff] %vm725_vm2, %v736_v2  ;;  %v708_v56 = vadd.f32 %v699_v3, %v561_v1 }
 0x20d   : > { %v712_v4 = vmax.f32 %v708_v56, 0.0 }
 0x20f   : > { %v733_v6 = vadd.f32 %v712_v4, %v597_v57 }
 0x211   : > { %v737_v7 = vmax.f32 %v733_v6, 0.0 }
 0x213   : > { %741 = vst.msk [vmem:[%s1198_s13 + $0x38] sm:$0xff] %vm725_vm2, %v737_v7 }
 0x214 PF: > { %s14_s17 = sadd.s32 1, %s953_s17   ;;  %s1292_s15 = smov %s949_s16 }
 0x215   : > { %p11_p5 = scmp.ge.s32.totalorder %s14_s17, 4   ;;  %s1293_s16 = smov %s1295_s18 }
 0x217   :  { %13 = sbr.rel (!%p11_p5) target bundleno = 2 (0x2), region = 70 }

</bundles_post_ra>
